<compile_context>
chip_gen: v6e
topology: v6e:2x2x1
jax: 0.10.0
libtpu: 0.0.40
codegen_flags: <defaults>
</compile_context>

<pallas_src>
import functools

import jax
import jax.numpy as jnp
from jax import lax
from jax.experimental import pallas as pl


def _row_windows(x3, H):
    """(B, H+2, C) -> (B*H, 3*C): row (b,h) = rows h, h+1, h+2 of batch b.

    The dy-slices are cheap sublane shifts, the lane concat of equal-width
    pieces is a simple XLU shuffle, and the (B, H, .) -> (B*H, .) collapse is
    tile-aligned because H == 8 (one sublane tile per batch).
    """
    B, _, C = x3.shape
    win = jnp.concatenate([x3[:, dy:dy + H, :] for dy in range(3)], axis=-1)
    return win.reshape(B * H, 3 * C)


def _qnet_fused_kernel(x_ref, w1_ref, b1_ref, w2_ref, b2_ref, wl_ref, bl_ref,
                       o_ref, *, B, H, W, Ch, A):
    """Fused conv3x3 -> ReLU -> conv3x3 -> flatten -> linear, one grid step.

    x_ref:  (B, H+2, (W+2)*Cin)  zero-padded NHWC input, rows lane-flattened
    w1_ref: (3*(W+2)*Cin, W*Ch)  conv1 band weight (3x3 taps folded in)
    b1_ref: (1, W*Ch)            conv1 bias tiled over w
    w2_ref: (3*W*Ch, W*Ch)       conv2 band weight (taps + horizontal pad folded in)
    b2_ref: (1, W*Ch)
    wl_ref: (A, H, W*Ch)         linear weight permuted to slab (h, w, ch) order
    bl_ref: (1, A)
    o_ref:  (B, A)
    """
    WC = W * Ch

    # ---- conv1: ONE MXU matmul, M=B*H, K=3*(W+2)*Cin, N=W*Ch ----
    l1 = _row_windows(x_ref[...], H)                                  # (B*H, 120)
    h1 = jnp.dot(l1, w1_ref[...], preferred_element_type=jnp.float32)  # (B*H, 256)
    h1 = jnp.maximum(h1 + b1_ref[...], 0.0)

    # ---- conv2: vertical zero rows only (horizontal pad lives in the band
    #      weight), then ONE MXU matmul, M=B*H, K=3*W*Ch=768, N=W*Ch ----
    zrow = jnp.zeros((B, 1, WC), jnp.float32)
    h1p = jnp.concatenate([zrow, h1.reshape(B, H, WC), zrow], axis=1)  # (B, H+2, 256)
    l2 = _row_windows(h1p, H)                                          # (B*H, 768)
    h2 = jnp.dot(l2, w2_ref[...], preferred_element_type=jnp.float32)  # (B*H, 256)
    h2 = h2 + b2_ref[...]

    # ---- linear: A=4 multiply+reduce passes, concatenated once (no masked
    #      scatter, no iota/where) ----
    h2b = h2.reshape(B, H, WC)
    cols = []
    for a in range(A):
        prod = h2b * wl_ref[a][None, :, :]                             # (B, H, 256)
        cols.append(jnp.sum(jnp.sum(prod, axis=2), axis=1, keepdims=True))  # (B, 1)
    o_ref[...] = jnp.concatenate(cols, axis=1) + bl_ref[...]


def prepare_qnet_params(params, H, W):
    """One-time parameter relayouts (hoisted out of the per-call forward path)."""
    w1, b1, w2, b2, wl, bl = (params[k] for k in ("w1", "b1", "w2", "b2", "wl", "bl"))
    Ch, Cin = w1.shape[0], w1.shape[1]
    A = wl.shape[0]
    f32 = jnp.float32

    # conv1 band weight: rows = (dy, x_padded, cin), cols = (w, cout).
    # W1BD[dy, x, ci, w, co] = w1[co, ci, dy, x - w] when 0 <= x - w <= 2.
    w1_t = jnp.transpose(w1, (2, 3, 1, 0)).astype(f32)          # (3, 3, Cin, Ch)
    w1bd = jnp.zeros((3, W + 2, Cin, W, Ch), f32)
    for w in range(W):
        w1bd = w1bd.at[:, w:w + 3, :, w, :].set(w1_t)
    w1bd = w1bd.reshape(3 * (W + 2) * Cin, W * Ch)

    # conv2 band weight: rows = (dy, w_src, cin), cols = (w, cout).  The
    # horizontal zero-padding is implicit in the band structure (missing taps
    # at w=0 / w=W-1 simply have zero weight), so the kernel needs no rolls.
    w2_t = jnp.transpose(w2, (2, 3, 1, 0)).astype(f32)          # (3, 3, Ch, Ch)
    w2bd = jnp.zeros((3, W, Ch, W, Ch), f32)
    for w in range(W):
        for dx in range(3):
            ws = w + dx - 1
            if 0 <= ws < W:
                w2bd = w2bd.at[:, ws, :, w, :].set(w2_t[:, dx, :, :])
    w2bd = w2bd.reshape(3 * W * Ch, W * Ch)

    prep = {
        "w1bd": w1bd,
        "b1s": jnp.tile(b1.astype(f32), W).reshape(1, W * Ch),
        "w2bd": w2bd,
        "b2s": jnp.tile(b2.astype(f32), W).reshape(1, W * Ch),
        # PyTorch flattens (C, H, W); permute once to the slab's (h, w, c) order
        # so the kernel never relayouts activations back to NCHW.
        "wl3": jnp.transpose(wl.reshape(A, Ch, H, W), (0, 2, 3, 1))
                   .reshape(A, H, W * Ch).astype(f32),
        "blm": bl.reshape(1, A).astype(f32),
    }
    dims = (H, W, Cin, Ch, A)
    return prep, dims


@functools.partial(jax.jit, static_argnums=(2,))
def qnetwork_forward(obs_nchw, prep, dims):
    """Forward pass matching QNetwork.forward (torch's host-side print omitted)."""
    H, W, Cin, Ch, A = dims
    B = obs_nchw.shape[0]

    # Minimal per-call glue: NCHW -> NHWC + spatial zero-pad; the conv1 row
    # windows (im2col) are built inside the kernel, so no col1 HBM round-trip.
    x = jnp.transpose(obs_nchw, (0, 2, 3, 1)).astype(jnp.float32)
    xp = jnp.pad(x, ((0, 0), (1, 1), (1, 1), (0, 0))).reshape(B, H + 2, (W + 2) * Cin)

    kernel = functools.partial(_qnet_fused_kernel, B=B, H=H, W=W, Ch=Ch, A=A)
    return pl.pallas_call(
        kernel,
        out_shape=jax.ShapeDtypeStruct((B, A), jnp.float32),
        in_specs=[
            pl.BlockSpec((B, H + 2, (W + 2) * Cin), lambda: (0, 0, 0)),
            pl.BlockSpec((3 * (W + 2) * Cin, W * Ch), lambda: (0, 0)),
            pl.BlockSpec((1, W * Ch), lambda: (0, 0)),
            pl.BlockSpec((3 * W * Ch, W * Ch), lambda: (0, 0)),
            pl.BlockSpec((1, W * Ch), lambda: (0, 0)),
            pl.BlockSpec((A, H, W * Ch), lambda: (0, 0, 0)),
            pl.BlockSpec((1, A), lambda: (0, 0)),
        ],
        out_specs=pl.BlockSpec((B, A), lambda: (0, 0)),
    )(xp, prep["w1bd"], prep["b1s"], prep["w2bd"], prep["b2s"],
      prep["wl3"], prep["blm"])


def reference_forward(obs, params):
    """Pure-JAX reference replicating the PyTorch module exactly (NCHW)."""
    dn = ("NCHW", "OIHW", "NCHW")
    y = lax.conv_general_dilated(obs, params["w1"], (1, 1), "SAME",
                                 dimension_numbers=dn)
    y = y + params["b1"][None, :, None, None]
    y = jnp.maximum(y, 0.0)
    y = lax.conv_general_dilated(y, params["w2"], (1, 1), "SAME",
                                 dimension_numbers=dn)
    y = y + params["b2"][None, :, None, None]
    flat = y.reshape(obs.shape[0], -1)
    return flat @ params["wl"].T + params["bl"]


if __name__ == "__main__":
    # Small shapes consistent with the module: obs_size=(4, 8, 8), hidden=32, actions=4.
    B, Cin, H, W = 2, 4, 8, 8
    Ch, A = 32, 4

    key = jax.random.PRNGKey(0)
    ks = jax.random.split(key, 7)
    params = {
        "w1": 0.10 * jax.random.normal(ks[0], (Ch, Cin, 3, 3), jnp.float32),
        "b1": 0.10 * jax.random.normal(ks[1], (Ch,), jnp.float32),
        "w2": 0.05 * jax.random.normal(ks[2], (Ch, Ch, 3, 3), jnp.float32),
        "b2": 0.10 * jax.random.normal(ks[3], (Ch,), jnp.float32),
        "wl": 0.02 * jax.random.normal(ks[4], (A, Ch * H * W), jnp.float32),
        "bl": 0.10 * jax.random.normal(ks[5], (A,), jnp.float32),
    }
    obs = jax.random.normal(ks[6], (B, Cin, H, W), jnp.float32)

    prep, dims = prepare_qnet_params(params, H, W)   # one-time relayout (hoisted)
    q = qnetwork_forward(obs, prep, dims)
    q = jax.block_until_ready(q)

    q_ref = reference_forward(obs, params)
    assert q.shape == (B, A), q.shape
    err = jnp.max(jnp.abs(q - q_ref))
    assert jnp.allclose(q, q_ref, atol=1e-3, rtol=1e-3), ("mismatch vs reference", err)
    print("KERNEL_OK")
</pallas_src>

<mosaic_0001>
module attributes {stable_mosaic.version = 11 : i64} {
  func.func @_qnet_fused_kernel(%arg0: memref<2x10x40xf32, #tpu.memory_space<vmem>>, %arg1: memref<120x256xf32, #tpu.memory_space<vmem>>, %arg2: memref<1x256xf32, #tpu.memory_space<vmem>>, %arg3: memref<768x256xf32, #tpu.memory_space<vmem>>, %arg4: memref<1x256xf32, #tpu.memory_space<vmem>>, %arg5: memref<4x8x256xf32, #tpu.memory_space<vmem>>, %arg6: memref<1x4xf32, #tpu.memory_space<vmem>>, %arg7: memref<2x4xf32, #tpu.memory_space<vmem>>) attributes {dimension_semantics = [], scalar_prefetch = 0 : i64, scratch_operands = 0 : i64, tpu.core_type = #tpu.core_type<tc>} {
    %c0 = arith.constant 0 : index
    %c0_0 = arith.constant 0 : index
    %c0_1 = arith.constant 0 : index
    %0 = vector.load %arg0[%c0, %c0_0, %c0_1] : memref<2x10x40xf32, #tpu.memory_space<vmem>>, vector<2x10x40xf32>
    %1 = vector.extract_strided_slice %0 {offsets = [0, 0, 0], sizes = [2, 8, 40], strides = [1, 1, 1]} : vector<2x10x40xf32> to vector<2x8x40xf32>
    %2 = vector.extract_strided_slice %0 {offsets = [0, 1, 0], sizes = [2, 8, 40], strides = [1, 1, 1]} : vector<2x10x40xf32> to vector<2x8x40xf32>
    %3 = vector.extract_strided_slice %0 {offsets = [0, 2, 0], sizes = [2, 8, 40], strides = [1, 1, 1]} : vector<2x10x40xf32> to vector<2x8x40xf32>
    %4 = tpu.concatenate %1, %2, %3 in 2 : vector<2x8x40xf32>, vector<2x8x40xf32>, vector<2x8x40xf32> -> vector<2x8x120xf32>
    %5 = vector.shape_cast %4 : vector<2x8x120xf32> to vector<16x120xf32>
    %c0_2 = arith.constant 0 : index
    %c0_3 = arith.constant 0 : index
    %6 = vector.load %arg1[%c0_2, %c0_3] : memref<120x256xf32, #tpu.memory_space<vmem>>, vector<120x256xf32>
    %cst = arith.constant dense<0.000000e+00> : vector<16x256xf32>
    %7 = tpu.matmul %5, %6, %cst {dimension_numbers = #tpu.dot_dimension_numbers<[1], [0], [0], [1], [0, 0, 1, 1], [], []>} : vector<16x120xf32>, vector<120x256xf32>, vector<16x256xf32> -> vector<16x256xf32>
    %c0_4 = arith.constant 0 : index
    %c0_5 = arith.constant 0 : index
    %8 = vector.load %arg2[%c0_4, %c0_5] : memref<1x256xf32, #tpu.memory_space<vmem>>, vector<1x256xf32>
    %9 = vector.broadcast %8 : vector<1x256xf32> to vector<16x256xf32>
    %10 = arith.addf %7, %9 : vector<16x256xf32>
    %cst_6 = arith.constant 0.000000e+00 : f32
    %11 = vector.broadcast %cst_6 : f32 to vector<16x256xf32>
    %12 = arith.maximumf %10, %11 : vector<16x256xf32>
    %cst_7 = arith.constant 0.000000e+00 : f32
    %13 = vector.broadcast %cst_7 : f32 to vector<2x1x256xf32>
    %14 = vector.shape_cast %12 : vector<16x256xf32> to vector<2x8x256xf32>
    %15 = tpu.concatenate %13, %14, %13 in 1 : vector<2x1x256xf32>, vector<2x8x256xf32>, vector<2x1x256xf32> -> vector<2x10x256xf32>
    %16 = vector.extract_strided_slice %15 {offsets = [0, 0, 0], sizes = [2, 8, 256], strides = [1, 1, 1]} : vector<2x10x256xf32> to vector<2x8x256xf32>
    %17 = vector.extract_strided_slice %15 {offsets = [0, 1, 0], sizes = [2, 8, 256], strides = [1, 1, 1]} : vector<2x10x256xf32> to vector<2x8x256xf32>
    %18 = vector.extract_strided_slice %15 {offsets = [0, 2, 0], sizes = [2, 8, 256], strides = [1, 1, 1]} : vector<2x10x256xf32> to vector<2x8x256xf32>
    %19 = tpu.concatenate %16, %17, %18 in 2 : vector<2x8x256xf32>, vector<2x8x256xf32>, vector<2x8x256xf32> -> vector<2x8x768xf32>
    %20 = vector.shape_cast %19 : vector<2x8x768xf32> to vector<16x768xf32>
    %c0_8 = arith.constant 0 : index
    %c0_9 = arith.constant 0 : index
    %21 = vector.load %arg3[%c0_8, %c0_9] : memref<768x256xf32, #tpu.memory_space<vmem>>, vector<768x256xf32>
    %cst_10 = arith.constant dense<0.000000e+00> : vector<16x256xf32>
    %22 = tpu.matmul %20, %21, %cst_10 {dimension_numbers = #tpu.dot_dimension_numbers<[1], [0], [0], [1], [0, 0, 1, 1], [], []>} : vector<16x768xf32>, vector<768x256xf32>, vector<16x256xf32> -> vector<16x256xf32>
    %c0_11 = arith.constant 0 : index
    %c0_12 = arith.constant 0 : index
    %23 = vector.load %arg4[%c0_11, %c0_12] : memref<1x256xf32, #tpu.memory_space<vmem>>, vector<1x256xf32>
    %24 = vector.broadcast %23 : vector<1x256xf32> to vector<16x256xf32>
    %25 = arith.addf %22, %24 : vector<16x256xf32>
    %26 = vector.shape_cast %25 : vector<16x256xf32> to vector<2x8x256xf32>
    %c0_13 = arith.constant 0 : index
    %c0_14 = arith.constant 0 : index
    %c0_15 = arith.constant 0 : index
    %27 = vector.load %arg5[%c0_13, %c0_14, %c0_15] : memref<4x8x256xf32, #tpu.memory_space<vmem>>, vector<1x8x256xf32>
    %28 = vector.shape_cast %27 : vector<1x8x256xf32> to vector<8x256xf32>
    %29 = vector.shape_cast %28 : vector<8x256xf32> to vector<1x8x256xf32>
    %30 = vector.broadcast %29 : vector<1x8x256xf32> to vector<2x8x256xf32>
    %31 = arith.mulf %26, %30 : vector<2x8x256xf32>
    %cst_16 = arith.constant dense<0.000000e+00> : vector<2x8xf32>
    %32 = vector.multi_reduction <add>, %31, %cst_16 [2] : vector<2x8x256xf32> to vector<2x8xf32>
    %cst_17 = arith.constant dense<0.000000e+00> : vector<2xf32>
    %33 = vector.multi_reduction <add>, %32, %cst_17 [1] : vector<2x8xf32> to vector<2xf32>
    %34 = vector.shape_cast %33 : vector<2xf32> to vector<2x1xf32>
    %c1 = arith.constant 1 : index
    %c0_18 = arith.constant 0 : index
    %c0_19 = arith.constant 0 : index
    %35 = vector.load %arg5[%c1, %c0_18, %c0_19] : memref<4x8x256xf32, #tpu.memory_space<vmem>>, vector<1x8x256xf32>
    %36 = vector.shape_cast %35 : vector<1x8x256xf32> to vector<8x256xf32>
    %37 = vector.shape_cast %36 : vector<8x256xf32> to vector<1x8x256xf32>
    %38 = vector.broadcast %37 : vector<1x8x256xf32> to vector<2x8x256xf32>
    %39 = arith.mulf %26, %38 : vector<2x8x256xf32>
    %cst_20 = arith.constant dense<0.000000e+00> : vector<2x8xf32>
    %40 = vector.multi_reduction <add>, %39, %cst_20 [2] : vector<2x8x256xf32> to vector<2x8xf32>
    %cst_21 = arith.constant dense<0.000000e+00> : vector<2xf32>
    %41 = vector.multi_reduction <add>, %40, %cst_21 [1] : vector<2x8xf32> to vector<2xf32>
    %42 = vector.shape_cast %41 : vector<2xf32> to vector<2x1xf32>
    %c2 = arith.constant 2 : index
    %c0_22 = arith.constant 0 : index
    %c0_23 = arith.constant 0 : index
    %43 = vector.load %arg5[%c2, %c0_22, %c0_23] : memref<4x8x256xf32, #tpu.memory_space<vmem>>, vector<1x8x256xf32>
    %44 = vector.shape_cast %43 : vector<1x8x256xf32> to vector<8x256xf32>
    %45 = vector.shape_cast %44 : vector<8x256xf32> to vector<1x8x256xf32>
    %46 = vector.broadcast %45 : vector<1x8x256xf32> to vector<2x8x256xf32>
    %47 = arith.mulf %26, %46 : vector<2x8x256xf32>
    %cst_24 = arith.constant dense<0.000000e+00> : vector<2x8xf32>
    %48 = vector.multi_reduction <add>, %47, %cst_24 [2] : vector<2x8x256xf32> to vector<2x8xf32>
    %cst_25 = arith.constant dense<0.000000e+00> : vector<2xf32>
    %49 = vector.multi_reduction <add>, %48, %cst_25 [1] : vector<2x8xf32> to vector<2xf32>
    %50 = vector.shape_cast %49 : vector<2xf32> to vector<2x1xf32>
    %c3 = arith.constant 3 : index
    %c0_26 = arith.constant 0 : index
    %c0_27 = arith.constant 0 : index
    %51 = vector.load %arg5[%c3, %c0_26, %c0_27] : memref<4x8x256xf32, #tpu.memory_space<vmem>>, vector<1x8x256xf32>
    %52 = vector.shape_cast %51 : vector<1x8x256xf32> to vector<8x256xf32>
    %53 = vector.shape_cast %52 : vector<8x256xf32> to vector<1x8x256xf32>
    %54 = vector.broadcast %53 : vector<1x8x256xf32> to vector<2x8x256xf32>
    %55 = arith.mulf %26, %54 : vector<2x8x256xf32>
    %cst_28 = arith.constant dense<0.000000e+00> : vector<2x8xf32>
    %56 = vector.multi_reduction <add>, %55, %cst_28 [2] : vector<2x8x256xf32> to vector<2x8xf32>
    %cst_29 = arith.constant dense<0.000000e+00> : vector<2xf32>
    %57 = vector.multi_reduction <add>, %56, %cst_29 [1] : vector<2x8xf32> to vector<2xf32>
    %58 = vector.shape_cast %57 : vector<2xf32> to vector<2x1xf32>
    %59 = tpu.concatenate %34, %42, %50, %58 in 1 : vector<2x1xf32>, vector<2x1xf32>, vector<2x1xf32>, vector<2x1xf32> -> vector<2x4xf32>
    %c0_30 = arith.constant 0 : index
    %c0_31 = arith.constant 0 : index
    %60 = vector.load %arg6[%c0_30, %c0_31] : memref<1x4xf32, #tpu.memory_space<vmem>>, vector<1x4xf32>
    %61 = vector.broadcast %60 : vector<1x4xf32> to vector<2x4xf32>
    %62 = arith.addf %59, %61 : vector<2x4xf32>
    %c0_32 = arith.constant 0 : index
    %c0_33 = arith.constant 0 : index
    %63 = vector.load %arg7[%c0_32, %c0_33] : memref<2x4xf32, #tpu.memory_space<vmem>>, vector<2x4xf32>
    tpu.vector_store %arg7[%c0_32, %c0_33], %62 {strides = array<i32>} : memref<2x4xf32, #tpu.memory_space<vmem>>, vector<2x4xf32>,
    return
  }
}

</mosaic_0001>

<bundles_post_ra>
// kernel: qnetwork_forward.1
= control target key start
LH: loop header
LB: loop body
LE: loop exit
PB: predicated region body
PF: predicated region fallthrough
CT: control target
= control target key end

     0   :  { %12 = vsyncpa [#allocation3], 0  ;;  %s1203_s0 = inlined_call_operand.vmem [shape: f32[2,10,40], index: 0, kind: input, shape index: {}]   ;;  %s1204_s1 = inlined_call_operand.vmem [shape: f32[120,256], index: 1, kind: input, shape index: {}]   ;;  %s1205_s2 = inlined_call_operand.vmem [shape: f32[1,256], index: 2, kind: input, shape index: {}]   ;;  %s1206_s3 = inlined_call_operand.hbm [shape: f32[768,256], index: 3, kind: input, shape index: {}]   ;;  %s1207_s4 = inlined_call_operand.vmem [shape: f32[1,256], index: 4, kind: input, shape index: {}]   ;;  %s1208_s5 = inlined_call_operand.vmem [shape: f32[4,8,256], index: 5, kind: input, shape index: {}]   ;;  %s1209_s6 = inlined_call_operand.vmem [shape: f32[1,4], index: 6, kind: input, shape index: {}]   ;;  %s1210_s7 = inlined_call_operand.hbm [shape: f32[2,4], index: 7, kind: output, shape index: {}]  }
   0x1   :  { %13 = vsyncpa [#allocation4], 0  ;;  %s921_s24 = smov [#allocation2]  }
   0x2   :  { %s25_s25 = sshll.u32 %s921_s24, 4  ;;  %s26_s25 = int_to_ptr.vmem [resolvable:$true] %s25_s25 }
   0x3   :  { %s885_s26 = scalar_lea.vmem %s26_s25, 24576  ;;  %p890_p1 = scmp.lt.s32.totalorder %s26_s25, %s26_s25 }
   0x4   :  { %p886_p0 = scmp.ne.s32.totalorder %s26_s25, %s885_s26  ;;  %p891_p2 = scmp.lt.s32.totalorder %s885_s26, %s885_s26 }
   0x6   :  { %p892_p3 = por %p891_p2, %p890_p1 }
   0x8   :  { %p893_p4 = pnand %p892_p3, %p886_p0 }
   0xa   :  { %896 = shalt.err (!%p893_p4)
}
   0xb   :  { %s922_s27 = smov 256   ;;  %s923_s28 = smov 16  }
   0xc   :  { %31 = dma.hbm_to_vmem [thread:$0]  %s1206_s3, 24576, %s26_s25, [#allocation3], %s922_s27, %s922_s27, %s923_s28  }
   0xd   :  { %917 = dma.done.wait [#allocation3], 24576  }
   0xe   :  { %918 = vsyncadd [#allocation3], 4294942720  ;;  %v924_v0 = vmov 0.0   ;;  %vm49_vm0 = vcmask 1046528   ;;  %v975_v1 = vld [vmem:[%s1203_s0] sm:$0xff]  ;;  %v983_v3 = vld [vmem:[%s1203_s0 + $0x10] sm:$0xff] }
   0xf   :  { %194 = vmatprep.mubr.f32.mxu0 %v924_v0  ;;  %v42_v2 = vld [vmem:[%s1203_s0 + $0x8] sm:$0x3]  ;;  %vm62_vm1 = vcmask 1045504   ;;  %v50_v4 = vrot.slane %v975_v1, 1  ;;  %v44_v6 = vld [vmem:[%s1203_s0 + $0x18] sm:$0x3] }
  0x10   :  { %v51_v5 = vrot.slane %v42_v2, 1  ;;  %v53_v7 = vrot.slane %v983_v3, 1  ;;  %v63_v8 = vrot.slane %v975_v1, 2  ;;  %v54_v9 = vrot.slane %v44_v6, 1  ;;  %v110_v13 = vld [vmem:[%s1204_s1 + $0xe8] sm:$0xff]  ;;  %v109_v14 = vld [vmem:[%s1204_s1 + $0xe0] sm:$0xff] }
  0x11   :  { %v64_v10 = vrot.slane %v42_v2, 2  ;;  %v66_v11 = vrot.slane %v983_v3, 2  ;;  %v67_v12 = vrot.slane %v44_v6, 2  ;;  %132 = vmatprep.subr.mxu0 %v110_v13  ;;  %v108_v16 = vld [vmem:[%s1204_s1 + $0xd8] sm:$0xff]  ;;  %v107_v17 = vld [vmem:[%s1204_s1 + $0xd0] sm:$0xff]  ;;  %s925_s22 = smov 40  }
  0x12   :  { %v52_v15 = vsel %vm49_vm0, %v50_v4, %v51_v5  ;;  %v55_v18 = vsel %vm49_vm0, %v53_v7, %v54_v9  ;;  %133 = vmatpush1.msra.mxu0 %v109_v14  ;;  %v106_v19 = vld [vmem:[%s1204_s1 + $0xc8] sm:$0xff]  ;;  %v105_v21 = vld [vmem:[%s1204_s1 + $0xc0] sm:$0xff]  ;;  %v104_v23 = vld [vmem:[%s1204_s1 + $0xb8] sm:$0xff]  ;;  %s926_s8 = smov 80   ;;  %vm75_vm2 = vcmask 326656   ;;  %vm78_vm3 = vcmask 654336  }
  0x13   :  { %56 = vrot.lane.b32.xlu0 %v52_v15, %s925_s22  ;;  %58 = vrot.lane.b32.xlu1 %v55_v18, %s925_s22  ;;  %v65_v20 = vsel %vm62_vm1, %v63_v8, %v64_v10  ;;  %v68_v22 = vsel %vm62_vm1, %v66_v11, %v67_v12  ;;  %v103_v24 = vld [vmem:[%s1204_s1 + $0xb0] sm:$0xff]  ;;  %v102_v25 = vld [vmem:[%s1204_s1 + $0xa8] sm:$0xff]  ;;  %v303_v30 = vld [vmem:[#allocation2 + $0xf8] sm:$0xff]  ;;  %vm123_vm4 = vcmask 982016   ;;  %vm223_vm5 = vcmask 1040384   ;;  %s927_s19 = smov [#allocation5]  }
  0x14   :  { %134 = vmatprep.subr.mxu0 %v108_v16  ;;  %v101_v26 = vld [vmem:[%s1204_s1 + $0xa0] sm:$0xff]  ;;  %v100_v27 = vld [vmem:[%s1204_s1 + $0x98] sm:$0xff]  ;;  %v99_v28 = vld [vmem:[%s1204_s1 + $0x90] sm:$0xff]  ;;  %476 = vmatprep.subr.mxu1 %v303_v30  ;;  %vm731_vm7 = vcmask 1041409   ;;  %vm734_vm8 = vcmask 58368   ;;  %vm822_vm9 = vcmask 7168  }
  0x15   :  { %135 = vmatpush1.msra.mxu0 %v107_v17  ;;  %v98_v29 = vld [vmem:[%s1204_s1 + $0x88] sm:$0xff]  ;;  %v302_v31 = vld [vmem:[#allocation2 + $0xf0] sm:$0xff]  ;;  %v97_v32 = vld [vmem:[%s1204_s1 + $0x80] sm:$0xff]  ;;  %vm824_vm10 = vcmask 15360   ;;  %vm826_vm11 = vcmask 23552   ;;  %s844_s20 = sshll.u32 %s927_s19, 4  ;;  %s845_s20 = int_to_ptr.vmem [resolvable:$true] %s844_s20 }
  0x16   :  { %136 = vmatprep.subr.mxu0 %v106_v19  ;;  %v301_v33 = vld [vmem:[#allocation2 + $0xe8] sm:$0xff]  ;;  %v300_v34 = vld [vmem:[#allocation2 + $0xe0] sm:$0xff]  ;;  %v96_v35 = vld [vmem:[%s1204_s1 + $0x78] sm:$0xff]  ;;  %477 = vmatpush1.msra.mxu1 %v302_v31  ;;  %vm836_vm12 = vcmask 25600   ;;  %s897_s21 = scalar_lea.vmem %s845_s20, 32  ;;  %p902_p6 = scmp.lt.s32.totalorder %s845_s20, %s845_s20 }
  0x17   :  { %69 = vrot.lane.b32.xlu0 %v65_v20, %s926_s8  ;;  %137 = vmatpush1.msra.mxu0 %v105_v21  ;;  %v299_v36 = vld [vmem:[#allocation2 + $0xd8] sm:$0xff]  ;;  %v95_v37 = vld [vmem:[%s1204_s1 + $0x70] sm:$0xff]  ;;  %v94_v39 = vld [vmem:[%s1204_s1 + $0x68] sm:$0xff]  ;;  %p898_p5 = scmp.ne.s32.totalorder %s845_s20, %s897_s21  ;;  %p903_p7 = scmp.lt.s32.totalorder %s897_s21, %s897_s21 }
  0x18   :  { %71 = vrot.lane.b32.xlu1 %v68_v22, %s926_s8  ;;  %138 = vmatprep.subr.mxu0 %v104_v23  ;;  %v298_v38 = vld [vmem:[#allocation2 + $0xd0] sm:$0xff]  ;;  %v297_v40 = vld [vmem:[#allocation2 + $0xc8] sm:$0xff]  ;;  %v93_v41 = vld [vmem:[%s1204_s1 + $0x60] sm:$0xff] }
  0x19   :  { %139 = vmatpush1.msra.mxu0 %v103_v24  ;;  %478 = vmatprep.subr.mxu1 %v301_v33  ;;  %v296_v42 = vld [vmem:[#allocation2 + $0xc0] sm:$0xff]  ;;  %v92_v43 = vld [vmem:[%s1204_s1 + $0x58] sm:$0xff]  ;;  %v91_v45 = vld [vmem:[%s1204_s1 + $0x50] sm:$0xff]  ;;  %p904_p8 = por %p903_p7, %p902_p6 }
  0x1a   :  { %140 = vmatprep.subr.mxu0 %v102_v25  ;;  %479 = vmatpush1.msra.mxu1 %v300_v34  ;;  %v295_v44 = vld [vmem:[#allocation2 + $0xb8] sm:$0xff]  ;;  %v294_v46 = vld [vmem:[#allocation2 + $0xb0] sm:$0xff]  ;;  %v90_v47 = vld [vmem:[%s1204_s1 + $0x48] sm:$0xff] }
  0x1b   :  { %141 = vmatpush1.msra.mxu0 %v101_v26  ;;  %480 = vmatprep.subr.mxu1 %v299_v36  ;;  %v293_v48 = vld [vmem:[#allocation2 + $0xa8] sm:$0xff]  ;;  %v89_v49 = vld [vmem:[%s1204_s1 + $0x40] sm:$0xff]  ;;  %v88_v51 = vld [vmem:[%s1204_s1 + $0x38] sm:$0xff]  ;;  %p905_p9 = pnand %p904_p8, %p898_p5 }
  0x1c   :  { %142 = vmatprep.subr.mxu0 %v100_v27  ;;  %481 = vmatpush1.msra.mxu1 %v298_v38  ;;  %v292_v50 = vld [vmem:[#allocation2 + $0xa0] sm:$0xff]  ;;  %v291_v52 = vld [vmem:[#allocation2 + $0x98] sm:$0xff]  ;;  %v87_v53 = vld [vmem:[%s1204_s1 + $0x30] sm:$0xff] }
  0x1d   :  { %143 = vmatpush1.msra.mxu0 %v99_v28  ;;  %482 = vmatprep.subr.mxu1 %v297_v40  ;;  %v290_v54 = vld [vmem:[#allocation2 + $0x90] sm:$0xff]  ;;  %v86_v55 = vld [vmem:[%s1204_s1 + $0x28] sm:$0xff]  ;;  %v85_v57 = vld [vmem:[%s1204_s1 + $0x20] sm:$0xff] }
  0x1e   :  { %144 = vmatprep.subr.mxu0 %v98_v29  ;;  %483 = vmatpush1.msra.mxu1 %v296_v42  ;;  %v289_v56 = vld [vmem:[#allocation2 + $0x88] sm:$0xff]  ;;  %v288_v58 = vld [vmem:[#allocation2 + $0x80] sm:$0xff]  ;;  %v84_v59 = vld [vmem:[%s1204_s1 + $0x18] sm:$0xff] }
  0x1f   :  { %145 = vmatpush1.msra.mxu0 %v97_v32  ;;  %484 = vmatprep.subr.mxu1 %v295_v44  ;;  %v287_v60 = vld [vmem:[#allocation2 + $0x78] sm:$0xff]  ;;  %v83_v61 = vld [vmem:[%s1204_s1 + $0x10] sm:$0xff]  ;;  %v82_v63 = vld [vmem:[%s1204_s1 + $0x8] sm:$0xff] }
  0x20   :  { %146 = vmatprep.subr.mxu0 %v96_v35  ;;  %485 = vmatpush1.msra.mxu1 %v294_v46  ;;  %v286_v62 = vld [vmem:[#allocation2 + $0x70] sm:$0xff]  ;;  %v285_v2 = vld [vmem:[#allocation2 + $0x68] sm:$0xff]  ;;  %v81_v4 = vld [vmem:[%s1204_s1] sm:$0xff] }
  0x21   :  { %147 = vmatpush1.msra.mxu0 %v95_v37  ;;  %486 = vmatprep.subr.mxu1 %v293_v48  ;;  %v284_v5 = vld [vmem:[#allocation2 + $0x60] sm:$0xff]  ;;  %v367_v6 = vld [vmem:[#allocation2 + $0x2f8] sm:$0xff]  ;;  %v282_v8 = vld [vmem:[#allocation2 + $0x50] sm:$0xff] }
  0x22   :  { %148 = vmatprep.subr.mxu0 %v94_v39  ;;  %487 = vmatpush1.msra.mxu1 %v292_v50  ;;  %v283_v7 = vld [vmem:[#allocation2 + $0x58] sm:$0xff]  ;;  %v281_v9 = vld [vmem:[#allocation2 + $0x48] sm:$0xff]  ;;  %v280_v10 = vld [vmem:[#allocation2 + $0x40] sm:$0xff] }
  0x23   :  { %149 = vmatpush1.msra.mxu0 %v93_v41  ;;  %488 = vmatprep.subr.mxu1 %v291_v52  ;;  %v279_v11 = vld [vmem:[#allocation2 + $0x38] sm:$0xff]  ;;  %v278_v12 = vld [vmem:[#allocation2 + $0x30] sm:$0xff]  ;;  %v277_v13 = vld [vmem:[#allocation2 + $0x28] sm:$0xff] }
  0x24   :  { %150 = vmatprep.subr.mxu0 %v92_v43  ;;  %489 = vmatpush1.msra.mxu1 %v290_v54  ;;  %v276_v14 = vld [vmem:[#allocation2 + $0x20] sm:$0xff]  ;;  %v275_v15 = vld [vmem:[#allocation2 + $0x18] sm:$0xff]  ;;  %v274_v16 = vld [vmem:[#allocation2 + $0x10] sm:$0xff] }
  0x25   :  { %151 = vmatpush1.msra.mxu0 %v91_v45  ;;  %490 = vmatprep.subr.mxu1 %v289_v56  ;;  %v273_v17 = vld [vmem:[#allocation2 + $0x8] sm:$0xff]  ;;  %v272_v18 = vld [vmem:[#allocation2] sm:$0xff]  ;;  %v335_v19 = vld [vmem:[#allocation2 + $0x1f8] sm:$0xff] }
  0x26   :  { %152 = vmatprep.subr.mxu0 %v90_v47  ;;  %491 = vmatpush1.msra.mxu1 %v288_v58  ;;  %v334_v20 = vld [vmem:[#allocation2 + $0x1f0] sm:$0xff]  ;;  %v333_v21 = vld [vmem:[#allocation2 + $0x1e8] sm:$0xff]  ;;  %v332_v22 = vld [vmem:[#allocation2 + $0x1e0] sm:$0xff] }
  0x27   :  { %153 = vmatpush1.msra.mxu0 %v89_v49  ;;  %492 = vmatprep.subr.mxu1 %v287_v60  ;;  %v331_v23 = vld [vmem:[#allocation2 + $0x1d8] sm:$0xff]  ;;  %v330_v24 = vld [vmem:[#allocation2 + $0x1d0] sm:$0xff]  ;;  %v329_v25 = vld [vmem:[#allocation2 + $0x1c8] sm:$0xff] }
  0x28   :  { %154 = vmatprep.subr.mxu0 %v88_v51  ;;  %493 = vmatpush1.msra.mxu1 %v286_v62  ;;  %v328_v26 = vld [vmem:[#allocation2 + $0x1c0] sm:$0xff]  ;;  %v327_v27 = vld [vmem:[#allocation2 + $0x1b8] sm:$0xff]  ;;  %v326_v28 = vld [vmem:[#allocation2 + $0x1b0] sm:$0xff] }
  0x29   :  { %155 = vmatpush1.msra.mxu0 %v87_v53  ;;  %494 = vmatprep.subr.mxu1 %v285_v2  ;;  %v325_v29 = vld [vmem:[#allocation2 + $0x1a8] sm:$0xff]  ;;  %v324_v30 = vld [vmem:[#allocation2 + $0x1a0] sm:$0xff]  ;;  %v323_v31 = vld [vmem:[#allocation2 + $0x198] sm:$0xff] }
  0x2a   :  { %156 = vmatprep.subr.mxu0 %v86_v55  ;;  %495 = vmatpush1.msra.mxu1 %v284_v5  ;;  %v322_v32 = vld [vmem:[#allocation2 + $0x190] sm:$0xff]  ;;  %v321_v33 = vld [vmem:[#allocation2 + $0x188] sm:$0xff]  ;;  %v320_v34 = vld [vmem:[#allocation2 + $0x180] sm:$0xff] }
  0x2b   :  { %157 = vmatpush1.msra.mxu0 %v85_v57  ;;  %496 = vmatprep.subr.mxu1 %v283_v7  ;;  %v319_v35 = vld [vmem:[#allocation2 + $0x178] sm:$0xff]  ;;  %v318_v36 = vld [vmem:[#allocation2 + $0x170] sm:$0xff]  ;;  %v317_v37 = vld [vmem:[#allocation2 + $0x168] sm:$0xff] }
  0x2c   :  { %158 = vmatprep.subr.mxu0 %v84_v59  ;;  %497 = vmatpush1.msra.mxu1 %v282_v8  ;;  %v316_v38 = vld [vmem:[#allocation2 + $0x160] sm:$0xff]  ;;  %v315_v39 = vld [vmem:[#allocation2 + $0x158] sm:$0xff]  ;;  %v314_v40 = vld [vmem:[#allocation2 + $0x150] sm:$0xff] }
  0x2d   :  { %159 = vmatpush1.msra.mxu0 %v83_v61  ;;  %498 = vmatprep.subr.mxu1 %v281_v9  ;;  %v313_v41 = vld [vmem:[#allocation2 + $0x148] sm:$0xff]  ;;  %v366_v47 = vld [vmem:[#allocation2 + $0x2f0] sm:$0xff]  ;;  %v364_v51 = vld [vmem:[#allocation2 + $0x2e0] sm:$0xff] }
  0x2e   :  { %160 = vmatprep.subr.mxu0 %v82_v63  ;;  %499 = vmatpush1.msra.mxu1 %v280_v10  ;;  %v365_v50 = vld [vmem:[#allocation2 + $0x2e8] sm:$0xff]  ;;  %v363_v53 = vld [vmem:[#allocation2 + $0x2d8] sm:$0xff]  ;;  %v362_v54 = vld [vmem:[#allocation2 + $0x2d0] sm:$0xff] }
  0x2f   :  { %161 = vmatpush1.msra.mxu0 %v81_v4  ;;  %500 = vmatprep.subr.mxu1 %v279_v11  ;;  %v361_v55 = vld [vmem:[#allocation2 + $0x2c8] sm:$0xff]  ;;  %v358_v56 = vld [vmem:[#allocation2 + $0x2b0] sm:$0xff]  ;;  %v356_v58 = vld [vmem:[#allocation2 + $0x2a0] sm:$0xff] }
  0x30   :  { %553 = vmatprep.subr.mxu0 %v367_v6  ;;  %501 = vmatpush1.msra.mxu1 %v278_v12  ;;  %v357_v57 = vld [vmem:[#allocation2 + $0x2a8] sm:$0xff]  ;;  %v354_v59 = vld [vmem:[#allocation2 + $0x290] sm:$0xff]  ;;  %v352_v61 = vld [vmem:[#allocation2 + $0x280] sm:$0xff] }
  0x31   :  { %502 = vmatprep.subr.mxu1 %v277_v13  ;;  %v353_v60 = vld [vmem:[#allocation2 + $0x288] sm:$0xff]  ;;  %v351_v62 = vld [vmem:[#allocation2 + $0x278] sm:$0xff]  ;;  %v350_v63 = vld [vmem:[#allocation2 + $0x270] sm:$0xff] }
  0x32   :  { %503 = vmatpush1.msra.mxu1 %v276_v14  ;;  %v349_v2 = vld [vmem:[#allocation2 + $0x268] sm:$0xff]  ;;  %v348_v4 = vld [vmem:[#allocation2 + $0x260] sm:$0xff]  ;;  %v347_v5 = vld [vmem:[#allocation2 + $0x258] sm:$0xff] }
  0x33   :  { %504 = vmatprep.subr.mxu1 %v275_v15  ;;  %v346_v6 = vld [vmem:[#allocation2 + $0x250] sm:$0xff]  ;;  %v345_v7 = vld [vmem:[#allocation2 + $0x248] sm:$0xff]  ;;  %v344_v8 = vld [vmem:[#allocation2 + $0x240] sm:$0xff] }
  0x34   :  { %505 = vmatpush1.msra.mxu1 %v274_v16  ;;  %v343_v9 = vld [vmem:[#allocation2 + $0x238] sm:$0xff]  ;;  %v342_v10 = vld [vmem:[#allocation2 + $0x230] sm:$0xff]  ;;  %v341_v11 = vld [vmem:[#allocation2 + $0x228] sm:$0xff] }
  0x35   :  { %506 = vmatprep.subr.mxu1 %v273_v17  ;;  %v340_v12 = vld [vmem:[#allocation2 + $0x220] sm:$0xff]  ;;  %v339_v13 = vld [vmem:[#allocation2 + $0x218] sm:$0xff]  ;;  %v338_v14 = vld [vmem:[#allocation2 + $0x210] sm:$0xff] }
  0x36   :  { %507 = vmatpush1.msra.mxu1 %v272_v18  ;;  %v337_v15 = vld [vmem:[#allocation2 + $0x208] sm:$0xff]  ;;  %v336_v16 = vld [vmem:[#allocation2 + $0x200] sm:$0xff]  ;;  %v399_v17 = vld [vmem:[#allocation2 + $0x3f8] sm:$0xff] }
  0x37   :  { %508 = vmatprep.subr.mxu1 %v335_v19  ;;  %v398_v18 = vld [vmem:[#allocation2 + $0x3f0] sm:$0xff]  ;;  %v397_v19 = vld [vmem:[#allocation2 + $0x3e8] sm:$0xff]  ;;  %vm1104_vm6 = vmneg %vm223_vm5 }
  0x38   :  { %509 = vmatpush2.msra.mxu1 %v334_v20  ;;  %v396_v20 = vld [vmem:[#allocation2 + $0x3e0] sm:$0xff] }
  0x39   :  { %510 = vmatprep.subr.mxu1 %v333_v21  ;;  %v395_v21 = vld [vmem:[#allocation2 + $0x3d8] sm:$0xff] }
  0x3a   :  { %511 = vmatpush2.msra.mxu1 %v332_v22  ;;  %v394_v22 = vld [vmem:[#allocation2 + $0x3d0] sm:$0xff] }
  0x3b   :  { %512 = vmatprep.subr.mxu1 %v331_v23  ;;  %v393_v23 = vld [vmem:[#allocation2 + $0x3c8] sm:$0xff] }
  0x3c   :  { %513 = vmatpush2.msra.mxu1 %v330_v24  ;;  %v392_v24 = vld [vmem:[#allocation2 + $0x3c0] sm:$0xff] }
  0x3d   :  { %514 = vmatprep.subr.mxu1 %v329_v25  ;;  %v391_v25 = vld [vmem:[#allocation2 + $0x3b8] sm:$0xff] }
  0x3e   :  { %515 = vmatpush2.msra.mxu1 %v328_v26  ;;  %v390_v26 = vld [vmem:[#allocation2 + $0x3b0] sm:$0xff] }
  0x3f   :  { %516 = vmatprep.subr.mxu1 %v327_v27  ;;  %v389_v27 = vld [vmem:[#allocation2 + $0x3a8] sm:$0xff] }
  0x40   :  { %517 = vmatpush2.msra.mxu1 %v326_v28  ;;  %v388_v28 = vld [vmem:[#allocation2 + $0x3a0] sm:$0xff] }
  0x41   :  { %518 = vmatprep.subr.mxu1 %v325_v29  ;;  %v387_v29 = vld [vmem:[#allocation2 + $0x398] sm:$0xff] }
  0x42   :  { %519 = vmatpush2.msra.mxu1 %v324_v30  ;;  %v386_v30 = vld [vmem:[#allocation2 + $0x390] sm:$0xff] }
  0x43   :  { %520 = vmatprep.subr.mxu1 %v323_v31  ;;  %v385_v31 = vld [vmem:[#allocation2 + $0x388] sm:$0xff] }
  0x44   :  { %521 = vmatpush2.msra.mxu1 %v322_v32  ;;  %v384_v32 = vld [vmem:[#allocation2 + $0x380] sm:$0xff] }
  0x45   :  { %522 = vmatprep.subr.mxu1 %v321_v33  ;;  %v383_v33 = vld [vmem:[#allocation2 + $0x378] sm:$0xff] }
  0x46   :  { %523 = vmatpush2.msra.mxu1 %v320_v34  ;;  %v382_v34 = vld [vmem:[#allocation2 + $0x370] sm:$0xff] }
  0x47   :  { %524 = vmatprep.subr.mxu1 %v319_v35  ;;  %v312_v35 = vld [vmem:[#allocation2 + $0x140] sm:$0xff] }
  0x48   :  { %525 = vmatpush2.msra.mxu1 %v318_v36  ;;  %v381_v36 = vld [vmem:[#allocation2 + $0x368] sm:$0xff] }
  0x49   :  { %526 = vmatprep.subr.mxu1 %v317_v37  ;;  %v311_v37 = vld [vmem:[#allocation2 + $0x138] sm:$0xff] }
  0x4a   :  { %527 = vmatpush2.msra.mxu1 %v316_v38  ;;  %v380_v38 = vld [vmem:[#allocation2 + $0x360] sm:$0xff] }
  0x4b   :  { %528 = vmatprep.subr.mxu1 %v315_v39  ;;  %v310_v39 = vld [vmem:[#allocation2 + $0x130] sm:$0xff] }
  0x4c   :  { %529 = vmatpush2.msra.mxu1 %v314_v40  ;;  %v379_v40 = vld [vmem:[#allocation2 + $0x358] sm:$0xff] }
  0x4d   :  { %530 = vmatprep.subr.mxu1 %v313_v41  ;;  %v309_v41 = vld [vmem:[#allocation2 + $0x128] sm:$0xff] }
  0x4e   :  { %531 = vmatpush2.msra.mxu1 %v312_v35 }
  0x4f   :  { %532 = vmatprep.subr.mxu1 %v311_v37 }
  0x50   :  { %533 = vmatpush2.msra.mxu1 %v310_v39 }
  0x51   :  { %534 = vmatprep.subr.mxu1 %v309_v41  ;;  %v424_v41 = vld [vmem:[#allocation2 + $0x4c0] sm:$0xff] }
  0x85   :  { %v57_v42 = vpop.permute.xlu0 %56  ;;  %v59_v43 = vpop.permute.xlu1 %58 }
  0x86   :  { %v76_v44 = vsel %vm75_vm2, %v975_v1, %v57_v42  ;;  %v77_v45 = vsel %vm75_vm2, %v983_v3, %v59_v43  ;;  %v360_v1 = vld [vmem:[#allocation2 + $0x2c0] sm:$0xff]  ;;  %v359_v3 = vld [vmem:[#allocation2 + $0x2b8] sm:$0xff]  ;;  %v378_v42 = vld [vmem:[#allocation2 + $0x350] sm:$0xff] }
  0x87   :  { %v308_v43 = vld [vmem:[#allocation2 + $0x120] sm:$0xff] }
  0x88   :  { %535 = vmatpush2.msra.mxu1 %v308_v43 }
  0x89   :  { %v70_v46 = vpop.permute.xlu0 %69 }
  0x8a   :  { %v79_v48 = vsel %vm78_vm3, %v76_v44, %v70_v46  ;;  %v72_v49 = vpop.permute.xlu1 %71  ;;  %v377_v44 = vld [vmem:[#allocation2 + $0x348] sm:$0xff]  ;;  %v376_v46 = vld [vmem:[#allocation2 + $0x340] sm:$0xff] }
  0x8b   :  { %853 = vmatmul.mubr.msk.f32.vlgmr.msra.gmra.mxu0 %vm123_vm4, %v79_v48  ;;  %v80_v52 = vsel %vm78_vm3, %v77_v45, %v72_v49  ;;  %v307_v45 = vld [vmem:[#allocation2 + $0x118] sm:$0xff]  ;;  %v305_v49 = vld [vmem:[#allocation2 + $0x108] sm:$0xff] }
  0x8c   :  { %200 = vmatprep.mubr.f32.mxu0 %v924_v0  ;;  %554 = vmatpush1.msra.mxu0 %v366_v47  ;;  %v355_v0 = vld [vmem:[#allocation2 + $0x298] sm:$0xff]  ;;  %v306_v47 = vld [vmem:[#allocation2 + $0x110] sm:$0xff] }
  0x8d   :  { %555 = vmatprep.subr.mxu0 %v365_v50  ;;  %536 = vmatprep.subr.mxu1 %v307_v45  ;;  %v375_v48 = vld [vmem:[#allocation2 + $0x338] sm:$0xff]  ;;  %v374_v50 = vld [vmem:[#allocation2 + $0x330] sm:$0xff] }
  0x8e   :  { %556 = vmatpush1.msra.mxu0 %v364_v51  ;;  %537 = vmatpush2.msra.mxu1 %v306_v47  ;;  %v304_v51 = vld [vmem:[#allocation2 + $0x100] sm:$0xff] }
  0x8f   :  { %854 = vmatmul.mubr.msk.f32.gmra.mxu0 %vm123_vm4, %v80_v52  ;;  %557 = vmatprep.subr.mxu0 %v363_v53  ;;  %v373_v52 = vld [vmem:[#allocation2 + $0x328] sm:$0xff]  ;;  %v372_v53 = vld [vmem:[#allocation2 + $0x320] sm:$0xff] }
  0x90   :  { %558 = vmatpush1.msra.mxu0 %v362_v54  ;;  %538 = vmatprep.subr.mxu1 %v305_v49  ;;  %v431_v54 = vld [vmem:[#allocation2 + $0x4f8] sm:$0xff]  ;;  %v421_v49 = vld [vmem:[#allocation2 + $0x4a8] sm:$0xff] }
  0x91   :  { %559 = vmatprep.subr.mxu0 %v361_v55  ;;  %539 = vmatpush2.msra.mxu1 %v304_v51  ;;  %v371_v55 = vld [vmem:[#allocation2 + $0x318] sm:$0xff]  ;;  %v420_v51 = vld [vmem:[#allocation2 + $0x4a0] sm:$0xff] }
  0x92   :  { %560 = vmatpush1.msra.mxu0 %v360_v1  ;;  %630 = vmatprep.subr.mxu1 %v431_v54  ;;  %v370_v1 = vld [vmem:[#allocation2 + $0x310] sm:$0xff] }
  0x93   :  { %561 = vmatprep.subr.mxu0 %v359_v3  ;;  %v369_v3 = vld [vmem:[#allocation2 + $0x308] sm:$0xff]  ;;  %v418_v54 = vld [vmem:[#allocation2 + $0x490] sm:$0xff] }
  0x94   :  { %562 = vmatpush1.msra.mxu0 %v358_v56  ;;  %v368_v56 = vld [vmem:[#allocation2 + $0x300] sm:$0xff] }
  0x95   :  { %563 = vmatprep.subr.mxu0 %v357_v57  ;;  %v113_v57 = vlaneseq }
  0x96   :  { %564 = vmatpush1.msra.mxu0 %v356_v58 }
  0x97   :  { %565 = vmatprep.subr.mxu0 %v355_v0  ;;  %v1092_v58 = vshrl.u32 %v113_v57, 7 }
  0x98   :  { %566 = vmatpush1.msra.mxu0 %v354_v59  ;;  %v111_v59 = vld [vmem:[%s1205_s2] sm:$0x3] }
  0x99   :  { %567 = vmatprep.subr.mxu0 %v353_v60  ;;  %v115_v0 = vsub.s32 0, %v1092_v58  ;;  %v119_v60 = vsub.s32 1, %v1092_v58 }
  0x9a   :  { %568 = vmatpush1.msra.mxu0 %v352_v61 }
  0x9b   :  { %569 = vmatprep.subr.mxu0 %v351_v62  ;;  %v116_v61 = vrot.slane %v111_v59, %v115_v0  ;;  %v120_v62 = vrot.slane %v111_v59, %v119_v60  ;;  %v413_v59 = vld [vmem:[#allocation2 + $0x468] sm:$0xff] }
  0x9c   :  { %570 = vmatpush1.msra.mxu0 %v350_v63 }
  0x9d   :  { %571 = vmatprep.subr.mxu0 %v349_v2 }
  0x9e   :  { %572 = vmatpush1.msra.mxu0 %v348_v4 }
  0x9f   :  { %573 = vmatprep.subr.mxu0 %v347_v5 }
  0xa0   :  { %574 = vmatpush1.msra.mxu0 %v346_v6 }
  0xa1   :  { %575 = vmatprep.subr.mxu0 %v345_v7 }
  0xa2   :  { %576 = vmatpush1.msra.mxu0 %v344_v8 }
  0xa3   :  { %577 = vmatprep.subr.mxu0 %v343_v9 }
  0xa4   :  { %578 = vmatpush1.msra.mxu0 %v342_v10 }
  0xa5   :  { %579 = vmatprep.subr.mxu0 %v341_v11 }
  0xa6   :  { %580 = vmatpush1.msra.mxu0 %v340_v12  ;;  %v400_v12 = vld [vmem:[#allocation2 + $0x400] sm:$0xff] }
  0xa7   :  { %581 = vmatprep.subr.mxu0 %v339_v13 }
  0xa8   :  { %582 = vmatpush1.msra.mxu0 %v338_v14 }
  0xa9   :  { %583 = vmatprep.subr.mxu0 %v337_v15 }
  0xaa   :  { %584 = vmatpush1.msra.mxu0 %v336_v16 }
  0xab   :  { %585 = vmatprep.subr.mxu0 %v399_v17 }
  0xac   :  { %586 = vmatpush2.msra.mxu0 %v398_v18 }
  0xad   :  { %587 = vmatprep.subr.mxu0 %v397_v19  ;;  %v430_v19 = vld [vmem:[#allocation2 + $0x4f0] sm:$0xff] }
  0xae   :  { %588 = vmatpush2.msra.mxu0 %v396_v20 }
  0xaf   :  { %589 = vmatprep.subr.mxu0 %v395_v21 }
  0xb0   :  { %590 = vmatpush2.msra.mxu0 %v394_v22 }
  0xb1   :  { %591 = vmatprep.subr.mxu0 %v393_v23 }
  0xb2   :  { %592 = vmatpush2.msra.mxu0 %v392_v24  ;;  %v429_v24 = vld [vmem:[#allocation2 + $0x4e8] sm:$0xff] }
  0xb3   :  { %593 = vmatprep.subr.mxu0 %v391_v25  ;;  %v428_v25 = vld [vmem:[#allocation2 + $0x4e0] sm:$0xff] }
  0xb4   :  { %594 = vmatpush2.msra.mxu0 %v390_v26 }
  0xb5   :  { %595 = vmatprep.subr.mxu0 %v389_v27 }
  0xb6   :  { %596 = vmatpush2.msra.mxu0 %v388_v28 }
  0xb7   :  { %597 = vmatprep.subr.mxu0 %v387_v29 }
  0xb8   :  { %598 = vmatpush2.msra.mxu0 %v386_v30 }
  0xb9   :  { %599 = vmatprep.subr.mxu0 %v385_v31  ;;  %v427_v31 = vld [vmem:[#allocation2 + $0x4d8] sm:$0xff] }
  0xba   :  { %600 = vmatpush2.msra.mxu0 %v384_v32 }
  0xbb   :  { %601 = vmatprep.subr.mxu0 %v383_v33  ;;  %v426_v33 = vld [vmem:[#allocation2 + $0x4d0] sm:$0xff] }
  0xbc   :  { %602 = vmatpush2.msra.mxu0 %v382_v34 }
  0xbd   :  { %603 = vmatprep.subr.mxu0 %v381_v36 }
  0xbe   :  { %604 = vmatpush2.msra.mxu0 %v380_v38  ;;  %v425_v38 = vld [vmem:[#allocation2 + $0x4c8] sm:$0xff] }
  0xbf   :  { %605 = vmatprep.subr.mxu0 %v379_v40 }
  0xc0   :  { %606 = vmatpush2.msra.mxu0 %v378_v42 }
  0xc1   :  { %607 = vmatprep.subr.mxu0 %v377_v44  ;;  %v423_v44 = vld [vmem:[#allocation2 + $0x4b8] sm:$0xff] }
  0xc2   :  { %608 = vmatpush2.msra.mxu0 %v376_v46  ;;  %v422_v46 = vld [vmem:[#allocation2 + $0x4b0] sm:$0xff] }
  0xc3   :  { %609 = vmatprep.subr.mxu0 %v375_v48 }
  0xc4   :  { %610 = vmatpush2.msra.mxu0 %v374_v50 }
  0xc5   :  { %611 = vmatprep.subr.mxu0 %v373_v52 }
  0xc6   :  { %612 = vmatpush2.msra.mxu0 %v372_v53  ;;  %v419_v53 = vld [vmem:[#allocation2 + $0x498] sm:$0xff] }
  0xc7   :  { %613 = vmatprep.subr.mxu0 %v371_v55  ;;  %v417_v55 = vld [vmem:[#allocation2 + $0x488] sm:$0xff] }
  0xc8   :  { %614 = vmatpush2.msra.mxu0 %v370_v1  ;;  %v416_v1 = vld [vmem:[#allocation2 + $0x480] sm:$0xff] }
  0xc9   :  { %615 = vmatprep.subr.mxu0 %v369_v3  ;;  %v415_v3 = vld [vmem:[#allocation2 + $0x478] sm:$0xff] }
  0xca   :  { %616 = vmatpush2.msra.mxu0 %v368_v56  ;;  %v414_v56 = vld [vmem:[#allocation2 + $0x470] sm:$0xff] }
 0x14b   :  { %v196_v63 = vpop.f32.mrf.mxu0 }
 0x14c   :  { %v197_v2 = vadd.f32 %v196_v63, %v116_v61  ;;  %v410_v63 = vld [vmem:[#allocation2 + $0x450] sm:$0xff] }
 0x14d   :  { %v198_v4 = vpop.f32.mrf.mxu0 }
 0x14e   :  { %v207_v5 = vmax.f32 %v197_v2, 0.0  ;;  %v199_v6 = vadd.f32 %v198_v4, %v120_v62  ;;  %v409_v2 = vld [vmem:[#allocation2 + $0x448] sm:$0xff]  ;;  %v408_v4 = vld [vmem:[#allocation2 + $0x440] sm:$0xff] }
 0x14f   :  { %v202_v7 = vpop.f32.mrf.mxu0 }
 0x150   :  { %v215_v8 = vrot.slane %v207_v5, 7  ;;  %v208_v9 = vmax.f32 %v199_v6, 0.0  ;;  %v203_v10 = vadd.f32 %v202_v7, %v116_v61  ;;  %v412_v61 = vld [vmem:[#allocation2 + $0x460] sm:$0xff]  ;;  %v407_v5 = vld [vmem:[#allocation2 + $0x438] sm:$0xff]  ;;  %v406_v6 = vld [vmem:[#allocation2 + $0x430] sm:$0xff] }
 0x151   :  { %v204_v11 = vpop.f32.mrf.mxu0  ;;  %v405_v7 = vld [vmem:[#allocation2 + $0x428] sm:$0xff] }
 0x152   :  { %v1109_v13 = vsel %vm223_vm5, 0.0, %v215_v8  ;;  %v1112_v14 = vsel %vm223_vm5, %v215_v8, 0.0  ;;  %v216_v15 = vrot.slane %v208_v9, 7  ;;  %v209_v16 = vmax.f32 %v203_v10, 0.0  ;;  %v403_v9 = vld [vmem:[#allocation2 + $0x418] sm:$0xff]  ;;  %v402_v10 = vld [vmem:[#allocation2 + $0x410] sm:$0xff] }
 0x153   :  { %v240_v17 = vrot.slane %v1109_v13, 1  ;;  %v241_v18 = vrot.slane %v1112_v14, 1  ;;  %v205_v23 = vadd.f32 %v204_v11, %v120_v62  ;;  %v411_v62 = vld [vmem:[#allocation2 + $0x458] sm:$0xff]  ;;  %v401_v11 = vld [vmem:[#allocation2 + $0x408] sm:$0xff] }
 0x154   :  { %v225_v20 = vsel %vm223_vm5, 0.0, %v216_v15  ;;  %v229_v21 = vsel %vm223_vm5, %v216_v15, 0.0  ;;  %v217_v22 = vrot.slane %v209_v16, 7  ;;  %856 = vmatprep.mubr.msk.f32.mxu1 %vm1104_vm6, %v216_v15  ;;  %v463_v15 = vld [vmem:[#allocation2 + $0x5f8] sm:$0xff]  ;;  %v462_v16 = vld [vmem:[#allocation2 + $0x5f0] sm:$0xff] }
 0x155   :  { %858 = vmatmul.mubr.msk.f32.vlgmr.msra.gmra.mxu1 %vm1104_vm6, %v215_v8  ;;  %v243_v26 = vrot.slane %v225_v20, 1  ;;  %v244_v27 = vrot.slane %v229_v21, 1  ;;  %v210_v30 = vmax.f32 %v205_v23, 0.0  ;;  %v259_v34 = vrot.slane %v225_v20, 2  ;;  %v404_v8 = vld [vmem:[#allocation2 + $0x420] sm:$0xff]  ;;  %v458_v20 = vld [vmem:[#allocation2 + $0x5d0] sm:$0xff] }
 0x156   :  { %v1123_v28 = vsel %vm223_vm5, 0.0, %v217_v22  ;;  %v1126_v29 = vsel %vm223_vm5, %v217_v22, 0.0  ;;  %631 = vmatpush1.msra.mxu1 %v430_v19  ;;  %v260_v35 = vrot.slane %v229_v21, 2  ;;  %v242_v37 = vsel %vm49_vm0, %v240_v17, %v241_v18  ;;  %v461_v17 = vld [vmem:[#allocation2 + $0x5e8] sm:$0xff]  ;;  %v460_v18 = vld [vmem:[#allocation2 + $0x5e0] sm:$0xff]  ;;  %v459_v19 = vld [vmem:[#allocation2 + $0x5d8] sm:$0xff] }
 0x157   :  { %632 = vmatprep.subr.mxu1 %v429_v24  ;;  %v245_v32 = vsel %vm49_vm0, %v243_v26, %v244_v27  ;;  %v218_v36 = vrot.slane %v210_v30, 7  ;;  %v246_v39 = vrot.slane %v1123_v28, 1  ;;  %v247_v40 = vrot.slane %v1126_v29, 1  ;;  %v457_v21 = vld [vmem:[#allocation2 + $0x5c8] sm:$0xff]  ;;  %v455_v23 = vld [vmem:[#allocation2 + $0x5b8] sm:$0xff]  ;;  %v454_v24 = vld [vmem:[#allocation2 + $0x5b0] sm:$0xff] }
 0x158   :  { %633 = vmatpush1.msra.mxu1 %v428_v25  ;;  %617 = vmatprep.mubr.f32.mxu0 %v245_v32  ;;  %v261_v45 = vsel %vm62_vm1, %v259_v34, %v260_v35  ;;  %v453_v25 = vld [vmem:[#allocation2 + $0x5a8] sm:$0xff]  ;;  %v452_v26 = vld [vmem:[#allocation2 + $0x5a0] sm:$0xff]  ;;  %v451_v27 = vld [vmem:[#allocation2 + $0x598] sm:$0xff] }
 0x159   :  { %634 = vmatprep.subr.mxu1 %v427_v31  ;;  %618 = vmatmul.mubr.f32.vlgmr.msra.gmra.mxu0 %v242_v37  ;;  %v1133_v42 = vsel %vm223_vm5, 0.0, %v218_v36  ;;  %v1136_v43 = vsel %vm223_vm5, %v218_v36, 0.0  ;;  %v248_v50 = vsel %vm49_vm0, %v246_v39, %v247_v40  ;;  %v450_v30 = vld [vmem:[#allocation2 + $0x590] sm:$0xff]  ;;  %v449_v31 = vld [vmem:[#allocation2 + $0x588] sm:$0xff]  ;;  %v448_v32 = vld [vmem:[#allocation2 + $0x580] sm:$0xff] }
 0x15a   :  { %860 = vmatprep.mubr.msk.f32.mxu1 %vm1104_vm6, %v218_v36  ;;  %635 = vmatpush1.msra.mxu1 %v426_v33  ;;  %v249_v47 = vrot.slane %v1133_v42, 1  ;;  %v250_v48 = vrot.slane %v1136_v43, 1  ;;  %v447_v33 = vld [vmem:[#allocation2 + $0x578] sm:$0xff]  ;;  %v446_v34 = vld [vmem:[#allocation2 + $0x570] sm:$0xff]  ;;  %v445_v35 = vld [vmem:[#allocation2 + $0x568] sm:$0xff] }
 0x15b   :  { %862 = vmatmul.mubr.msk.f32.gmra.mxu1 %vm1104_vm6, %v217_v22  ;;  %636 = vmatprep.subr.mxu1 %v425_v38  ;;  %v456_v22 = vld [vmem:[#allocation2 + $0x5c0] sm:$0xff]  ;;  %v443_v37 = vld [vmem:[#allocation2 + $0x558] sm:$0xff]  ;;  %v442_v38 = vld [vmem:[#allocation2 + $0x550] sm:$0xff] }
 0x15c   :  { %694 = vmatprep.mubr.f32.mxu1 %v261_v45  ;;  %637 = vmatpush1.msra.mxu1 %v424_v41  ;;  %v251_v52 = vsel %vm49_vm0, %v249_v47, %v250_v48  ;;  %v444_v36 = vld [vmem:[#allocation2 + $0x560] sm:$0xff]  ;;  %v441_v39 = vld [vmem:[#allocation2 + $0x548] sm:$0xff]  ;;  %v439_v41 = vld [vmem:[#allocation2 + $0x538] sm:$0xff] }
 0x15d   :  { %638 = vmatprep.subr.mxu1 %v423_v44  ;;  %623 = vmatprep.mubr.f32.mxu0 %v251_v52  ;;  %v440_v40 = vld [vmem:[#allocation2 + $0x540] sm:$0xff]  ;;  %v438_v44 = vld [vmem:[#allocation2 + $0x530] sm:$0xff]  ;;  %v437_v45 = vld [vmem:[#allocation2 + $0x528] sm:$0xff] }
 0x15e   :  { %639 = vmatpush1.msra.mxu1 %v422_v46  ;;  %624 = vmatmul.mubr.f32.gmra.mxu0 %v248_v50  ;;  %v436_v46 = vld [vmem:[#allocation2 + $0x520] sm:$0xff]  ;;  %v435_v47 = vld [vmem:[#allocation2 + $0x518] sm:$0xff]  ;;  %v434_v48 = vld [vmem:[#allocation2 + $0x510] sm:$0xff]  ;;  %v257_v50 = vrot.slane %v1112_v14, 2 }
 0x15f   :  { %640 = vmatprep.subr.mxu1 %v421_v49  ;;  %v256_v49 = vrot.slane %v1109_v13, 2  ;;  %v432_v52 = vld [vmem:[#allocation2 + $0x500] sm:$0xff] }
 0x160   :  { %641 = vmatpush1.msra.mxu1 %v420_v51  ;;  %v433_v51 = vld [vmem:[#allocation2 + $0x508] sm:$0xff] }
 0x161   :  { %642 = vmatprep.subr.mxu1 %v419_v53  ;;  %v265_v53 = vrot.slane %v1133_v42, 2  ;;  %v464_v42 = vld [vmem:[%s1207_s4] sm:$0x3] }
 0x162   :  { %643 = vmatpush1.msra.mxu1 %v418_v54  ;;  %v266_v54 = vrot.slane %v1136_v43, 2 }
 0x163   :  { %644 = vmatprep.subr.mxu1 %v417_v55  ;;  %v258_v55 = vsel %vm62_vm1, %v256_v49, %v257_v50 }
 0x164   :  { %645 = vmatpush1.msra.mxu1 %v416_v1  ;;  %v262_v1 = vrot.slane %v1123_v28, 2  ;;  %v267_v13 = vsel %vm62_vm1, %v265_v53, %v266_v54 }
 0x165   :  { %646 = vmatprep.subr.mxu1 %v415_v3  ;;  %v263_v3 = vrot.slane %v1126_v29, 2  ;;  %v473_v29 = vrot.slane %v464_v42, %v119_v60  ;;  %v866_v60 = vld [vmem:[%s1208_s5 + $0x28] sm:$0xff] }
 0x166   :  { %647 = vmatpush1.msra.mxu1 %v414_v56 }
 0x167   :  { %648 = vmatprep.subr.mxu1 %v413_v59  ;;  %v264_v14 = vsel %vm62_vm1, %v262_v1, %v263_v3  ;;  %v722_v3 = vand.u32 127, %v113_v57 }
 0x168   :  { %649 = vmatpush1.msra.mxu1 %v412_v61  ;;  %v469_v61 = vrot.slane %v464_v42, %v115_v0  ;;  %v865_v0 = vld [vmem:[%s1208_s5 + $0x20] sm:$0xff] }
 0x169   :  { %650 = vmatprep.subr.mxu1 %v411_v62 }
 0x16a   :  { %651 = vmatpush1.msra.mxu1 %v410_v63 }
 0x16b   :  { %652 = vmatprep.subr.mxu1 %v409_v2 }
 0x16c   :  { %653 = vmatpush1.msra.mxu1 %v408_v4 }
 0x16d   :  { %654 = vmatprep.subr.mxu1 %v407_v5 }
 0x16e   :  { %655 = vmatpush1.msra.mxu1 %v406_v6 }
 0x16f   :  { %656 = vmatprep.subr.mxu1 %v405_v7 }
 0x170   :  { %657 = vmatpush1.msra.mxu1 %v404_v8 }
 0x171   :  { %658 = vmatprep.subr.mxu1 %v403_v9 }
 0x172   :  { %659 = vmatpush1.msra.mxu1 %v402_v10 }
 0x173   :  { %660 = vmatprep.subr.mxu1 %v401_v11 }
 0x174   :  { %661 = vmatpush1.msra.mxu1 %v400_v12 }
 0x175   :  { %662 = vmatprep.subr.mxu1 %v463_v15 }
 0x176   :  { %663 = vmatpush2.msra.mxu1 %v462_v16  ;;  %v707_v16 = vld [vmem:[%s1208_s5] sm:$0xff] }
 0x177   :  { %664 = vmatprep.subr.mxu1 %v461_v17  ;;  %v708_v17 = vld [vmem:[%s1208_s5 + $0x8] sm:$0xff] }
 0x178   :  { %665 = vmatpush2.msra.mxu1 %v460_v18 }
 0x179   :  { %666 = vmatprep.subr.mxu1 %v459_v19 }
 0x17a   :  { %667 = vmatpush2.msra.mxu1 %v458_v20 }
 0x17b   :  { %668 = vmatprep.subr.mxu1 %v457_v21 }
 0x17c   :  { %669 = vmatpush2.msra.mxu1 %v456_v22 }
 0x17d   :  { %670 = vmatprep.subr.mxu1 %v455_v23  ;;  %v864_v23 = vld [vmem:[%s1208_s5 + $0x18] sm:$0xff] }
 0x17e   :  { %671 = vmatpush2.msra.mxu1 %v454_v24 }
 0x17f   :  { %672 = vmatprep.subr.mxu1 %v453_v25 }
 0x180   :  { %673 = vmatpush2.msra.mxu1 %v452_v26 }
 0x181   :  { %674 = vmatprep.subr.mxu1 %v451_v27 }
 0x182   :  { %675 = vmatpush2.msra.mxu1 %v450_v30 }
 0x183   :  { %676 = vmatprep.subr.mxu1 %v449_v31  ;;  %v863_v31 = vld [vmem:[%s1208_s5 + $0x10] sm:$0xff] }
 0x184   :  { %677 = vmatpush2.msra.mxu1 %v448_v32 }
 0x185   :  { %678 = vmatprep.subr.mxu1 %v447_v33 }
 0x186   :  { %679 = vmatpush2.msra.mxu1 %v446_v34 }
 0x187   :  { %680 = vmatprep.subr.mxu1 %v445_v35 }
 0x188   :  { %681 = vmatpush2.msra.mxu1 %v444_v36  ;;  %v868_v36 = vld [vmem:[%s1208_s5 + $0x38] sm:$0xff] }
 0x189   :  { %682 = vmatprep.subr.mxu1 %v443_v37 }
 0x18a   :  { %683 = vmatpush2.msra.mxu1 %v442_v38 }
 0x18b   :  { %684 = vmatprep.subr.mxu1 %v441_v39 }
 0x18c   :  { %685 = vmatpush2.msra.mxu1 %v440_v40  ;;  %v867_v40 = vld [vmem:[%s1208_s5 + $0x30] sm:$0xff] }
 0x18d   :  { %686 = vmatprep.subr.mxu1 %v439_v41 }
 0x18e   :  { %687 = vmatpush2.msra.mxu1 %v438_v44 }
 0x18f   :  { %688 = vmatprep.subr.mxu1 %v437_v45 }
 0x190   :  { %689 = vmatpush2.msra.mxu1 %v436_v46 }
 0x191   :  { %690 = vmatprep.subr.mxu1 %v435_v47 }
 0x192   :  { %691 = vmatpush2.msra.mxu1 %v434_v48 }
 0x193   :  { %692 = vmatprep.subr.mxu1 %v433_v51 }
 0x194   :  { %693 = vmatpush2.msra.mxu1 %v432_v52 }
 0x195   :  { %695 = vmatmul.mubr.f32.vlgmr.msra.gmra.mxu1 %v258_v55 }
 0x196   :  { %700 = vmatprep.mubr.f32.mxu1 %v267_v13 }
 0x199   :  { %701 = vmatmul.mubr.f32.gmra.mxu1 %v264_v14 }
 0x215   :  { %v542_v56 = vpop.f32.mrf.mxu1 }
 0x216   :  { %v543_v63 = vadd.f32 %v542_v56, %v469_v61  ;;  %v725_v56 = vsub.s32 %v722_v3, %v1092_v58 }
 0x217   :  { %v544_v43 = vpop.f32.mrf.mxu1 }
 0x218   :  { %v545_v5 = vadd.f32 %v544_v43, %v473_v29 }
 0x219   :  { %v619_v59 = vpop.f32.mrf.mxu0 }
 0x21a   :  { %v620_v6 = vadd.f32 %v619_v59, %v543_v63 }
 0x21b   :  { %v548_v28 = vpop.f32.mrf.mxu1  ;;  %v621_v62 = vpop.f32.mrf.mxu0 }
 0x21c   :  { %v549_v7 = vadd.f32 %v548_v28, %v469_v61  ;;  %v622_v10 = vadd.f32 %v621_v62, %v545_v5 }
 0x21d   :  { %v550_v2 = vpop.f32.mrf.mxu1 }
 0x21e   :  { %v625_v4 = vpop.f32.mrf.mxu0  ;;  %v551_v8 = vadd.f32 %v550_v2, %v473_v29 }
 0x21f   :  { %v626_v18 = vadd.f32 %v625_v4, %v549_v7 }
 0x220   :  { %v627_v11 = vpop.f32.mrf.mxu0 }
 0x221   :  { %v628_v20 = vadd.f32 %v627_v11, %v551_v8 }
 0x255   :  { %v696_v9 = vpop.f32.mrf.mxu1 }
 0x256   :  { %v697_v12 = vadd.f32 %v696_v9, %v620_v6 }
 0x257   :  { %v698_v15 = vpop.f32.mrf.mxu1 }
 0x258   :  { %v699_v19 = vadd.f32 %v698_v15, %v622_v10  ;;  %v769_v22 = vmul.f32 %v865_v0, %v697_v12  ;;  %v709_v26 = vmul.f32 %v707_v16, %v697_v12  ;;  %v741_v39 = vmul.f32 %v863_v31, %v697_v12 }
 0x259   :  { %v702_v21 = vpop.f32.mrf.mxu1  ;;  %v797_v47 = vmul.f32 %v867_v40, %v697_v12 }
 0x25a   :  { %v703_v24 = vadd.f32 %v702_v21, %v626_v18  ;;  %v770_v25 = vmul.f32 %v866_v60, %v699_v19  ;;  %v710_v27 = vmul.f32 %v708_v17, %v699_v19  ;;  %v742_v35 = vmul.f32 %v864_v23, %v699_v19 }
 0x25b   :  { %v704_v30 = vpop.f32.mrf.mxu1  ;;  %v798_v45 = vmul.f32 %v868_v36, %v699_v19  ;;  %v869_v19 = vld [vmem:[%s1209_s6] ss:$0 sm:$0xff] }
 0x25c   :  { %v705_v32 = vadd.f32 %v704_v30, %v628_v20  ;;  %v773_v33 = vadd.f32 %v770_v25, %v769_v22  ;;  %v713_v34 = vadd.f32 %v710_v27, %v709_v26  ;;  %v711_v37 = vmul.f32 %v707_v16, %v703_v24 }
 0x25d   :  { %v745_v44 = vadd.f32 %v742_v35, %v741_v39  ;;  %v743_v48 = vmul.f32 %v863_v31, %v703_v24  ;;  %v801_v49 = vadd.f32 %v798_v45, %v797_v47  ;;  %v771_v52 = vmul.f32 %v865_v0, %v703_v24 }
 0x25e   :  { %774 = vadd.xlane.f32.xlu1 %v773_v33  ;;  %714 = vadd.xlane.f32.xlu0 %v713_v34  ;;  %v712_v38 = vmul.f32 %v708_v17, %v705_v32  ;;  %v744_v46 = vmul.f32 %v864_v23, %v705_v32  ;;  %v772_v51 = vmul.f32 %v866_v60, %v705_v32 }
 0x25f   :  { %v800_v54 = vmul.f32 %v868_v36, %v705_v32  ;;  %v799_v55 = vmul.f32 %v867_v40, %v703_v24 }
 0x260   :  { %v716_v41 = vadd.f32 %v712_v38, %v711_v37  ;;  %v748_v50 = vadd.f32 %v744_v46, %v743_v48  ;;  %v776_v53 = vadd.f32 %v772_v51, %v771_v52 }
 0x261   :  { %v804_v1 = vadd.f32 %v800_v54, %v799_v55 }
 0x262   :  { %717 = vadd.xlane.f32.xlu1 %v716_v41  ;;  %746 = vadd.xlane.f32.xlu0 %v745_v44 }
 0x266   :  { %802 = vadd.xlane.f32.xlu1 %v801_v49  ;;  %749 = vadd.xlane.f32.xlu0 %v748_v50 }
 0x26a   :  { %777 = vadd.xlane.f32.xlu0 %v776_v53 }
 0x26e   :  { %805 = vadd.xlane.f32.xlu0 %v804_v1 }
 0x2e7   :  { %v775_v13 = vpop.xlane.xlu1 %774  ;;  %v715_v14 = vpop.xlane.xlu0 %714 }
 0x2e8   :  { %v726_v59 = vrot.slane %v715_v14, %v725_v56  ;;  %v784_v58 = vrot.slane %v775_v13, %v725_v56 }
 0x2eb   :  { %v718_v42 = vpop.xlane.xlu1 %717  ;;  %v747_v43 = vpop.xlane.xlu0 %746 }
 0x2ec   :  { %v730_v61 = vrot.slane %v718_v42, %v725_v56  ;;  %v756_v63 = vrot.slane %v747_v43, %v725_v56 }
 0x2ee   :  { %v732_v28 = vsel %vm731_vm7, %v730_v61, %v726_v59 }
 0x2ef   :  { %v750_v29 = vpop.xlane.xlu0 %749  ;;  %v735_v62 = vsel %vm734_vm8, %v732_v28, 0.0  ;;  %v803_v7 = vpop.xlane.xlu1 %802 }
 0x2f0   :  { %v760_v2 = vrot.slane %v750_v29, %v725_v56  ;;  %736 = vadd.xlane.f32.xlu1 %v735_v62  ;;  %v812_v11 = vrot.slane %v803_v7, %v725_v56 }
 0x2f2   :  { %v761_v57 = vsel %vm731_vm7, %v760_v2, %v756_v63 }
 0x2f3   :  { %v778_v4 = vpop.xlane.xlu0 %777  ;;  %v763_v5 = vsel %vm734_vm8, %v761_v57, 0.0 }
 0x2f4   :  { %v788_v6 = vrot.slane %v778_v4, %v725_v56  ;;  %764 = vadd.xlane.f32.xlu0 %v763_v5 }
 0x2f6   :  { %v789_v8 = vsel %vm731_vm7, %v788_v6, %v784_v58 }
 0x2f7   :  { %v806_v9 = vpop.xlane.xlu0 %805  ;;  %v791_v10 = vsel %vm734_vm8, %v789_v8, 0.0 }
 0x2f8   :  { %v816_v12 = vrot.slane %v806_v9, %v725_v56  ;;  %792 = vadd.xlane.f32.xlu1 %v791_v10 }
 0x2fa   :  { %v817_v0 = vsel %vm731_vm7, %v816_v12, %v812_v11 }
 0x2fb   :  { %v819_v15 = vsel %vm734_vm8, %v817_v0, 0.0 }
 0x2fc   :  { %820 = vadd.xlane.f32.xlu0 %v819_v15 }
 0x379   :  { %v737_v60 = vpop.xlane.xlu1 %736 }
 0x37d   :  { %v765_v16 = vpop.xlane.xlu0 %764 }
 0x37e   :  { %v823_v18 = vsel %vm822_vm9, %v737_v60, %v765_v16 }
 0x381   :  { %v793_v17 = vpop.xlane.xlu1 %792 }
 0x382   :  { %v825_v20 = vsel %vm824_vm10, %v823_v18, %v793_v17 }
 0x385   :  { %v821_v21 = vpop.xlane.xlu0 %820 }
 0x386   :  { %v827_v22 = vsel %vm826_vm11, %v825_v20, %v821_v21 }
 0x387   :  { %v835_v23 = vadd.f32 %v869_v19, %v827_v22 }
 0x389   :  { %837 = vst.msk [vmem:[#allocation5] sm:$0x3] %vm836_vm12, %v835_v23 }
 0x38a   :  { %908 = shalt.err (!%p905_p9)
}
 0x38b   :  { %847 = dma.vmem_to_hbm [thread:$0]  %s845_s20, 32, %s1210_s7, [#allocation4]  }
 0x38c   :  { %919 = dma.done.wait [#allocation4], 32  }
 0x38d   :  { %920 = vsyncadd [#allocation4], 4294967264 }
 0x38e   :  { %851 = vsyncpa [#allocation3], 1 }
 0x38f   :  { %852 = vsyncpa [#allocation4], 1 }

</bundles_post_ra>
